<compile_context>
chip_gen: v6e
topology: v6e:2x2x1
jax: 0.10.0
libtpu: 0.0.40
codegen_flags: <defaults>
</compile_context>

<pallas_src>
import functools

import jax
import jax.numpy as jnp
from jax.experimental import pallas as pl
from jax.experimental.pallas import tpu as pltpu

BN_EPS = 1e-5
_LANE = 128
_MAX_BN_UNROLL = 16  # cap on statically-unrolled batch sub-block


def _spdconv_kernel(x_ref, w_ref, b_ref, o_ref):
    """Pointwise conv (transposed matmul) + folded-BN bias + ReLU.

    x_ref: (bn, Cin, tm)   activations (channels on sublanes, space on lanes)
    w_ref: (Cout, Cin)     BN-folded conv weight (grid-invariant block)
    b_ref: (Cout, 1)       BN-folded bias (broadcast along lanes)
    o_ref: (bn, Cout, tm)
    """
    w = w_ref[...]
    b = b_ref[...]
    for i in range(x_ref.shape[0]):  # static unroll over the batch sub-block
        y = jnp.dot(w, x_ref[i], preferred_element_type=jnp.float32,
                    precision=jax.lax.Precision.HIGHEST)
        o_ref[i] = jnp.maximum(y + b, 0.0).astype(o_ref.dtype)


def space_to_depth_3d(x):
    """PyTorch SPD concat order on the channel axis (NCDHW kept).

    Offsets (d,h,w): (0,0,0),(1,0,0),(0,1,0),(1,1,0),
                     (0,0,1),(1,0,1),(0,1,1),(1,1,1).
    """
    parts = []
    for (dd, hh, ww) in [(0, 0, 0), (1, 0, 0), (0, 1, 0), (1, 1, 0),
                         (0, 0, 1), (1, 0, 1), (0, 1, 1), (1, 1, 1)]:
        parts.append(x[:, :, dd::2, hh::2, ww::2])
    return jnp.concatenate(parts, axis=1)  # (N, 8*c1, D/2, H/2, W/2)


def _largest_divisor_leq(n, cap):
    cap = max(1, min(n, cap))
    for d in range(cap, 0, -1):
        if n % d == 0:
            return d
    return 1


def _vmem_capped_target(target_bytes):
    """Cap the per-step byte target by a fraction of this generation's VMEM."""
    try:
        cap = pltpu.get_tpu_info().vmem_capacity_bytes
    except Exception:  # noqa: BLE001 - fall back to the smallest gen (v7x)
        cap = 64 * 1024 * 1024
    return int(min(target_bytes, cap // 16))


def _pick_tiles(n, cin, cout, msp, target_bytes):
    """Choose (bn, tm, grid_n, grid_m) so each step moves ~target_bytes."""
    bytes_per_col = 4 * (cin + cout)  # f32 input + output column

    # Spatial (lane) tile: full dim if small, else a multiple of 128 that
    # divides msp when possible (no ragged tail -> no clipped DMAs).
    if msp <= _LANE:
        tm = msp
    else:
        cap_cols = max(_LANE, target_bytes // bytes_per_col)
        cap_cols = min(cap_cols, msp)
        tm_cap = (cap_cols // _LANE) * _LANE
        tm = None
        if msp % _LANE == 0:
            for k in range(tm_cap // _LANE, 0, -1):
                if msp % (k * _LANE) == 0:
                    tm = k * _LANE
                    break
        if tm is None:
            tm = tm_cap  # ragged tail handled by Pallas boundary clipping

    # Batch sub-block: bring per-step bytes up to the target for small msp.
    want_bn = max(1, target_bytes // (bytes_per_col * tm))
    bn = _largest_divisor_leq(n, min(want_bn, _MAX_BN_UNROLL))

    grid_n = pl.cdiv(n, bn)
    grid_m = pl.cdiv(msp, tm)

    # Keep at least 2 grid blocks when possible (v7x: 2 TensorCores/chip).
    if grid_n * grid_m < 2:
        if n >= 2:
            bn = _largest_divisor_leq(n, max(1, n // 2))
        elif msp > _LANE and tm >= 2 * _LANE:
            half = ((tm // 2) // _LANE) * _LANE
            if half >= _LANE:
                tm = half
        grid_n = pl.cdiv(n, bn)
        grid_m = pl.cdiv(msp, tm)

    return bn, tm, grid_n, grid_m


@functools.partial(jax.jit, static_argnames=("target_block_bytes",))
def spdconv_3d(x, w, b, gamma, beta, running_mean, running_var, *,
               target_block_bytes=2 * 1024 * 1024):
    """x: (N, c1, D, H, W) float32, NCDHW. Returns (N, c2, D/2, H/2, W/2)."""
    # TODO(synk): PyTorch default train-mode BN would use batch statistics;
    # this implements inference-mode BN folded into the conv weights.
    if x.dtype != jnp.float32:
        x = x.astype(jnp.float32)

    xs = space_to_depth_3d(x)                     # (N, Cin, D2, H2, W2)
    n, cin, d2, h2, w2 = xs.shape
    cout = w.shape[0]
    msp = d2 * h2 * w2

    # (N, Cin, Msp): channels on sublanes, flattened space on lanes.  The
    # reshape is free; the strided-slice + concat producer is allowed to fuse
    # into the kernel's input DMA via allow_input_fusion below.
    x_mat = xs.reshape(n, cin, msp)

    # Fold eval-mode BatchNorm into the conv weight and bias.
    inv_std = jax.lax.rsqrt(running_var.astype(jnp.float32) + BN_EPS)
    scale = gamma.astype(jnp.float32) * inv_std                 # (Cout,)
    w_mat = w.reshape(cout, cin).astype(jnp.float32) * scale[:, None]
    b_fold = (b.astype(jnp.float32) - running_mean.astype(jnp.float32)) * scale
    b_fold = b_fold + beta.astype(jnp.float32)
    b_col = b_fold.reshape(cout, 1)

    target = _vmem_capped_target(target_block_bytes)
    bn, tm, grid_n, grid_m = _pick_tiles(n, cin, cout, msp, target)

    cost = pl.CostEstimate(
        flops=2 * n * msp * cin * cout,
        transcendentals=0,
        bytes_accessed=4 * (n * msp * cin + n * msp * cout + cin * cout + cout),
    )

    out = pl.pallas_call(
        _spdconv_kernel,
        out_shape=jax.ShapeDtypeStruct((n, cout, msp), jnp.float32),
        grid_spec=pltpu.PrefetchScalarGridSpec(
            num_scalar_prefetch=0,
            grid=(grid_n, grid_m),
            in_specs=[
                # Activations: bn samples x full channels x lane-dense tile.
                pl.BlockSpec((bn, cin, tm), lambda nb, mb: (nb, 0, mb)),
                # Invariant weight / bias: constant block index (no re-DMA).
                pl.BlockSpec((cout, cin), lambda nb, mb: (0, 0)),
                pl.BlockSpec((cout, 1), lambda nb, mb: (0, 0)),
            ],
            out_specs=pl.BlockSpec((bn, cout, tm), lambda nb, mb: (nb, 0, mb)),
        ),
        compiler_params=pltpu.CompilerParams(
            dimension_semantics=("parallel", "parallel"),
            vmem_limit_bytes=32 * 1024 * 1024,
            allow_input_fusion=[True, False, False],
        ),
        cost_estimate=cost,
    )(x_mat, w_mat, b_col)

    # (N, Cout, Msp) -> (N, Cout, D2, H2, W2): free reshape, no transpose.
    return out.reshape(n, cout, d2, h2, w2)


def _reference(x, w, b, gamma, beta, mean, var):
    xs = space_to_depth_3d(x)
    y = jnp.einsum("ncdhw,oc->nodhw", xs, w.reshape(w.shape[0], w.shape[1]),
                   precision=jax.lax.Precision.HIGHEST)
    y = y + b[None, :, None, None, None]
    y = (y - mean[None, :, None, None, None]) / jnp.sqrt(
        var[None, :, None, None, None] + BN_EPS)
    y = y * gamma[None, :, None, None, None] + beta[None, :, None, None, None]
    return jnp.maximum(y, 0.0)


if __name__ == "__main__":
    # Small shapes: batch=2, c1=4, D=H=W=8  ->  Cin = 8*c1 = 32, c2 = 8.
    n, c1, d, h, w_sp = 2, 4, 8, 8, 8
    c2 = 8
    cin = 8 * c1

    key = jax.random.PRNGKey(0)
    kx, kw, kb, kg, kbeta, km, kv = jax.random.split(key, 7)

    x = jax.random.normal(kx, (n, c1, d, h, w_sp), dtype=jnp.float32)
    # Conv3d(c1*8, c2, k=1) weight: (c2, cin, 1, 1, 1), bias: (c2,)
    conv_w = jax.random.normal(kw, (c2, cin, 1, 1, 1), dtype=jnp.float32) * 0.1
    conv_b = jax.random.normal(kb, (c2,), dtype=jnp.float32) * 0.1
    # BatchNorm3d(c2) params + running stats (inference mode).
    gamma = 1.0 + 0.1 * jax.random.normal(kg, (c2,), dtype=jnp.float32)
    beta = 0.1 * jax.random.normal(kbeta, (c2,), dtype=jnp.float32)
    running_mean = 0.1 * jax.random.normal(km, (c2,), dtype=jnp.float32)
    running_var = 1.0 + 0.1 * jax.random.uniform(kv, (c2,), dtype=jnp.float32)

    out = spdconv_3d(x, conv_w, conv_b, gamma, beta, running_mean, running_var)
    out = jax.block_until_ready(out)

    ref = _reference(x, conv_w, conv_b, gamma, beta, running_mean, running_var)
    assert out.shape == (n, c2, d // 2, h // 2, w_sp // 2), out.shape
    assert jnp.allclose(out, ref, atol=1e-4, rtol=1e-4), "mismatch vs reference"

    print("KERNEL_OK")
</pallas_src>

<mosaic_0001>
module attributes {stable_mosaic.version = 11 : i64} {
  func.func @_spdconv_kernel(%arg0: i32, %arg1: i32, %arg2: memref<1x32x64xf32, #tpu.memory_space<vmem>>, %arg3: memref<8x32xf32, #tpu.memory_space<vmem>>, %arg4: memref<8x1xf32, #tpu.memory_space<vmem>>, %arg5: memref<1x8x64xf32, #tpu.memory_space<vmem>>) attributes {dimension_semantics = [#tpu.dimension_semantics<parallel>, #tpu.dimension_semantics<parallel>], iteration_bounds = array<i64: 2, 1>, scalar_prefetch = 0 : i64, scratch_operands = 0 : i64, tpu.core_type = #tpu.core_type<tc>, window_params = [{transform_indices = @transform_0, window_bounds = array<i64: 1, 32, 64>}, {pipeline_mode = #tpu.pipeline_mode<synchronous>, transform_indices = @transform_1, window_bounds = array<i64: 8, 32>}, {pipeline_mode = #tpu.pipeline_mode<synchronous>, transform_indices = @transform_2, window_bounds = array<i64: 8, 1>}, {transform_indices = @transform_3, window_bounds = array<i64: 1, 8, 64>}]} {
    %c0 = arith.constant 0 : index
    %c0_0 = arith.constant 0 : index
    %0 = vector.load %arg3[%c0, %c0_0] : memref<8x32xf32, #tpu.memory_space<vmem>>, vector<8x32xf32>
    %c0_1 = arith.constant 0 : index
    %c0_2 = arith.constant 0 : index
    %1 = vector.load %arg4[%c0_1, %c0_2] : memref<8x1xf32, #tpu.memory_space<vmem>>, vector<8x1xf32>
    %c0_3 = arith.constant 0 : index
    %c0_4 = arith.constant 0 : index
    %c0_5 = arith.constant 0 : index
    %2 = vector.load %arg2[%c0_3, %c0_4, %c0_5] : memref<1x32x64xf32, #tpu.memory_space<vmem>>, vector<1x32x64xf32>
    %3 = vector.shape_cast %2 : vector<1x32x64xf32> to vector<32x64xf32>
    %cst = arith.constant dense<0.000000e+00> : vector<8x64xf32>
    %4 = tpu.matmul %0, %3, %cst {dimension_numbers = #tpu.dot_dimension_numbers<[1], [0], [0], [1], [0, 0, 1, 1], [], []>, precision = #tpu.contract_precision<fp32>} : vector<8x32xf32>, vector<32x64xf32>, vector<8x64xf32> -> vector<8x64xf32>
    %5 = vector.broadcast %1 : vector<8x1xf32> to vector<8x64xf32>
    %6 = arith.addf %4, %5 : vector<8x64xf32>
    %cst_6 = arith.constant 0.000000e+00 : f32
    %7 = vector.broadcast %cst_6 : f32 to vector<8x64xf32>
    %8 = arith.maximumf %6, %7 : vector<8x64xf32>
    %c0_7 = arith.constant 0 : index
    %c0_8 = arith.constant 0 : index
    %c0_9 = arith.constant 0 : index
    %9 = vector.load %arg5[%c0_7, %c0_8, %c0_9] : memref<1x8x64xf32, #tpu.memory_space<vmem>>, vector<1x8x64xf32>
    %10 = vector.shape_cast %9 : vector<1x8x64xf32> to vector<8x64xf32>
    %11 = vector.shape_cast %8 : vector<8x64xf32> to vector<1x8x64xf32>
    tpu.vector_store %arg5[%c0_7, %c0_8, %c0_9], %11 {strides = array<i32>} : memref<1x8x64xf32, #tpu.memory_space<vmem>>, vector<1x8x64xf32>,
    return
  }
  func.func @transform_0(%arg0: i32, %arg1: i32) -> (i32, i32, i32) {
    %c0_i32 = arith.constant 0 : i32
    %c0_i32_0 = arith.constant 0 : i32
    return %arg0, %c0_i32, %arg1 : i32, i32, i32
  }
  func.func @transform_1(%arg0: i32, %arg1: i32) -> (i32, i32) {
    %c0_i32 = arith.constant 0 : i32
    %c0_i32_0 = arith.constant 0 : i32
    %c0_i32_1 = arith.constant 0 : i32
    return %c0_i32, %c0_i32_0 : i32, i32
  }
  func.func @transform_2(%arg0: i32, %arg1: i32) -> (i32, i32) {
    %c0_i32 = arith.constant 0 : i32
    %c0_i32_0 = arith.constant 0 : i32
    %c0_i32_1 = arith.constant 0 : i32
    return %c0_i32, %c0_i32_0 : i32, i32
  }
  func.func @transform_3(%arg0: i32, %arg1: i32) -> (i32, i32, i32) {
    %c0_i32 = arith.constant 0 : i32
    %c0_i32_0 = arith.constant 0 : i32
    return %arg0, %c0_i32, %arg1 : i32, i32, i32
  }
}

</mosaic_0001>

<bundles_post_ra>
// kernel: spdconv_3d.1
= control target key start
LH: loop header
LB: loop body
LE: loop exit
PB: predicated region body
PF: predicated region fallthrough
CT: control target
= control target key end

     0   :  { %s962_s12 = smov 0   ;;  %s964_s13 = smov 0   ;;  %s1080_s0 = inlined_call_operand.vmem [shape: f32[2,32,64], index: 0, kind: input, shape index: {}]   ;;  %s1081_s1 = inlined_call_operand.vmem [shape: f32[8,32], index: 1, kind: input, shape index: {}]   ;;  %s1082_s2 = inlined_call_operand.vmem [shape: f32[8,1], index: 2, kind: input, shape index: {}]   ;;  %s1083_s3 = inlined_call_operand.vmem [shape: f32[2,8,64], index: 3, kind: output, shape index: {}]  }
   0x1   :  { %s966_s14 = smov 0  }
   0x2 LB: > { %s25_s15 = sadd.s32 1, %s933_s13  ;;  %p784_p0 = scmp.ge.s32.totalorder %s937_s14, 1  ;;  %s937_s14 = sphi %s966_s14, %s13_s14   ;;  %s933_s13 = sphi %s964_s13, %s1085_s13   ;;  %s929_s12 = sphi %s962_s12, %s1084_s12  }
   0x3   : > { %p27_p1 = scmp.ge.s32.totalorder %s25_s15, 2  ;;  %p156_p2 = scmp.lt.s32.totalorder %s937_s14, 3 }
   0x5   : > { %s1087_s15 = smov (%p27_p1, %s25_s15), 0  ;;  %p157_p3 = pnand %p784_p0, %p156_p2 }
   0x6   : > { %p185_p4 = scmp.lt.s32.totalorder (!%p157_p3), %s929_s12, 1 }
   0x7   : > { %160 = sbr.rel (%p157_p3) target bundleno = 249 (0xf9), region = 32 }
   0xc   : > { %v200_v0 = vld [vmem:[%s1081_s1] sm:$0xff]  ;;  %vm211_vm0 = vcmask 261120   ;;  %v939_v1 = vmov 0.0   ;;  %s1089_s12 = smov (!%p185_p4, %s929_s12), 1  ;;  %vm940_vm1 = vmmov 0   ;;  %v941_v5 = vmov 0  }
   0xd   : > { %821 = vmatprep.subr.mxu0 %v939_v1  ;;  %832 = vmatprep.subr.mxu1 %v939_v1  ;;  %v213_v2 = vsel %vm211_vm0, %v200_v0, 0  ;;  %v201_v3 = vld [vmem:[%s1082_s2] sm:$0xff]  ;;  %s790_s20 = sshll.u32 %s1089_s12, 5  ;;  %s787_s24 = sshll.u32 %s1089_s12, 3  ;;  %vm701_vm2 = vcmask 523264  }
   0xe   : > { %829 = vmatprep.mubr.msk.f32.mxu0 %vm940_vm1, %v939_v1  ;;  %v992_v4 = vand.u32 4294901760, %v213_v2  ;;  %840 = vmatprep.mubr.msk.f32.mxu1 %vm940_vm1, %v939_v1  ;;  %s192_s23 = scalar_lea.vmem %s1080_s0, %s790_s20  ;;  %s199_s27 = scalar_lea.vmem %s1083_s3, %s787_s24 }
   0xf   : > { %914 = vset.pattern.permute.xlu0 %v941_v5  ;;  %v205_v7 = vld [vmem:[%s192_s23 + $0x18] sm:$0xff]  ;;  %v204_v8 = vld [vmem:[%s192_s23 + $0x10] sm:$0xff]  ;;  %v203_v9 = vld [vmem:[%s192_s23 + $0x8] sm:$0xff] }
  0x10   : > { %v998_v6 = vsub.f32 %v213_v2, %v992_v4  ;;  %208 = vperm.xlu0 %914, %v201_v3   ;;  %v1004_v11 = vand.u32 4294901760, %v205_v7  ;;  %v1006_v12 = vand.u32 4294901760, %v204_v8  ;;  %v1008_v13 = vand.u32 4294901760, %v203_v9  ;;  %v202_v14 = vld [vmem:[%s192_s23] sm:$0xff] }
  0x11   : > { %v1010_v15 = vand.u32 4294901760, %v202_v14 }
  0x12   : > { %v286_v10 = vand.u32 4294901760, %v998_v6  ;;  %822 = vmatpush3.msra.mxu0 %v1004_v11  ;;  %v320_v17 = vsub.f32 %v205_v7, %v1004_v11  ;;  %v327_v18 = vsub.f32 %v204_v8, %v1006_v12  ;;  %v334_v19 = vsub.f32 %v203_v9, %v1008_v13 }
  0x13   : > { %823 = vmatprep.subr.mxu0 %v939_v1  ;;  %v341_v20 = vsub.f32 %v202_v14, %v1010_v15 }
  0x14   : > { %v287_v16 = vsub.f32 %v998_v6, %v286_v10  ;;  %824 = vmatpush3.msra.mxu0 %v1006_v12  ;;  %v321_v21 = vand.u32 4294901760, %v320_v17  ;;  %v328_v22 = vand.u32 4294901760, %v327_v18  ;;  %v335_v23 = vand.u32 4294901760, %v334_v19 }
  0x15   : > { %825 = vmatprep.subr.mxu0 %v939_v1  ;;  %v342_v25 = vand.u32 4294901760, %v341_v20 }
  0x16   : > { %v288_v24 = vand.u32 4294901760, %v287_v16  ;;  %826 = vmatpush3.msra.mxu0 %v1008_v13  ;;  %v322_v26 = vsub.f32 %v320_v17, %v321_v21  ;;  %v329_v27 = vsub.f32 %v327_v18, %v328_v22  ;;  %v336_v28 = vsub.f32 %v334_v19, %v335_v23 }
  0x17   : > { %827 = vmatprep.subr.mxu0 %v939_v1  ;;  %v343_v31 = vsub.f32 %v341_v20, %v342_v25 }
  0x18   : > { %828 = vmatpush3.msra.mxu0 %v1010_v15  ;;  %v323_v29 = vand.u32 4294901760, %v322_v26  ;;  %v330_v30 = vand.u32 4294901760, %v329_v27  ;;  %v337_v32 = vand.u32 4294901760, %v336_v28 }
  0x19   : > { %843 = vmatprep.subr.mxu0 %v939_v1  ;;  %830 = vmatmul.mubr.f32.vlgmr.msra.gmra.mxu0 %v288_v24  ;;  %v344_v33 = vand.u32 4294901760, %v343_v31 }
  0x1a   : > { %833 = vmatpush3.msra.mxu1 %v323_v29  ;;  %844 = vmatpush3.msra.mxu0 %v320_v17 }
  0x1b   : > { %834 = vmatprep.subr.mxu1 %v939_v1  ;;  %845 = vmatprep.subr.mxu0 %v939_v1 }
  0x1c   : > { %835 = vmatpush3.msra.mxu1 %v330_v30  ;;  %846 = vmatpush3.msra.mxu0 %v327_v18 }
  0x1d   : > { %836 = vmatprep.subr.mxu1 %v939_v1  ;;  %847 = vmatprep.subr.mxu0 %v939_v1 }
  0x1e   : > { %837 = vmatpush3.msra.mxu1 %v337_v32  ;;  %848 = vmatpush3.msra.mxu0 %v334_v19 }
  0x1f   : > { %838 = vmatprep.subr.mxu1 %v939_v1  ;;  %849 = vmatprep.subr.mxu0 %v939_v1 }
  0x20   : > { %839 = vmatpush3.msra.mxu1 %v344_v33  ;;  %850 = vmatpush3.msra.mxu0 %v341_v20 }
  0x21   : > { %841 = vmatmul.mubr.f32.vlgmr.msra.gmra.mxu1 %v992_v4  ;;  %854 = vmatprep.subr.mxu1 %v939_v1 }
  0x22   : > { %855 = vmatpush3.msra.mxu1 %v1004_v11  ;;  %851 = vmatprep.mubr.msk.f32.mxu0 %vm940_vm1, %v939_v1 }
  0x23   : > { %856 = vmatprep.subr.mxu1 %v939_v1  ;;  %865 = vmatprep.subr.mxu0 %v939_v1 }
  0x24   : > { %852 = vmatmul.mubr.f32.vlgmr.msra.gmra.mxu0 %v998_v6  ;;  %857 = vmatpush3.msra.mxu1 %v1006_v12 }
  0x25   : > { %866 = vmatpush3.msra.mxu0 %v321_v21  ;;  %858 = vmatprep.subr.mxu1 %v939_v1 }
  0x26   : > { %867 = vmatprep.subr.mxu0 %v939_v1  ;;  %859 = vmatpush3.msra.mxu1 %v1008_v13 }
  0x27   : > { %868 = vmatpush3.msra.mxu0 %v328_v22  ;;  %860 = vmatprep.subr.mxu1 %v939_v1 }
  0x28   : > { %869 = vmatprep.subr.mxu0 %v939_v1  ;;  %861 = vmatpush3.msra.mxu1 %v1010_v15 }
  0x29   : > { %862 = vmatprep.mubr.msk.f32.mxu1 %vm940_vm1, %v939_v1  ;;  %870 = vmatpush3.msra.mxu0 %v335_v23 }
  0x2a   : > { %863 = vmatmul.mubr.f32.vlgmr.msra.gmra.mxu1 %v286_v10  ;;  %871 = vmatprep.subr.mxu0 %v939_v1 }
  0x2b   : > { %876 = vmatprep.subr.mxu1 %v939_v1  ;;  %872 = vmatpush3.msra.mxu0 %v342_v25 }
  0x2c   : > { %873 = vmatprep.mubr.msk.f32.mxu0 %vm940_vm1, %v939_v1  ;;  %877 = vmatpush3.msra.mxu1 %v1004_v11 }
  0x2d   : > { %874 = vmatmul.mubr.f32.vlgmr.msra.gmra.mxu0 %v992_v4  ;;  %878 = vmatprep.subr.mxu1 %v939_v1 }
  0x2e   : > { %879 = vmatpush3.msra.mxu1 %v1006_v12  ;;  %884 = vmatprep.mubr.msk.f32.mxu1 %vm940_vm1, %v939_v1 }
  0x2f   : > { %880 = vmatprep.subr.mxu1 %v939_v1 }
  0x30   : > { %881 = vmatpush3.msra.mxu1 %v1008_v13 }
  0x31   : > { %882 = vmatprep.subr.mxu1 %v939_v1 }
  0x32   : > { %883 = vmatpush3.msra.mxu1 %v1010_v15 }
  0x33   : > { %885 = vmatmul.mubr.f32.vlgmr.msra.gmra.mxu1 %v992_v4 }
  0x8b   : > { %v209_v36 = vpop.permute.xlu0 %208 }
  0xd9   : > { %v290_v34 = vpop.f32.mrf.mxu0 }
  0xda   : > { %v291_v39 = vadd.f32 %v290_v34, %v209_v36 }
  0xdb   : > { %v831_v35 = vpop.f32.mrf.mxu0 }
  0xe1   : > { %v381_v37 = vpop.f32.mrf.mxu1 }
  0xe2   : > { %v382_v42 = vadd.f32 %v381_v37, %v291_v39 }
  0xe3   : > { %v842_v38 = vpop.f32.mrf.mxu1 }
  0xe4   : > { %v461_v40 = vpop.f32.mrf.mxu0 }
  0xe5   : > { %v462_v44 = vadd.f32 %v461_v40, %v382_v42 }
  0xe6   : > { %v853_v41 = vpop.f32.mrf.mxu0 }
  0xea   : > { %v538_v43 = vpop.f32.mrf.mxu1 }
  0xeb   : > { %v539_v47 = vadd.f32 %v538_v43, %v462_v44 }
  0xec   : > { %v864_v45 = vpop.f32.mrf.mxu1 }
  0xed   : > { %v621_v46 = vpop.f32.mrf.mxu0 }
  0xee   : > { %v622_v49 = vadd.f32 %v621_v46, %v539_v47 }
  0xef   : > { %v875_v48 = vpop.f32.mrf.mxu0 }
  0xf3   : > { %v696_v50 = vpop.f32.mrf.mxu1 }
  0xf4   : > { %v697_v51 = vadd.f32 %v696_v50, %v622_v49 }
  0xf5   : > { %v886_v52 = vpop.f32.mrf.mxu1 }
  0xf6   : > { %v700_v53 = vmax.f32 %v697_v51, 0.0 }
  0xf8   : > { %702 = vst.msk [vmem:[%s199_s27] sm:$0xff] %vm701_vm2, %v700_v53 }
  0xf9 PF: > { %s13_s14 = sadd.s32 1, %s937_s14   ;;  %s1084_s12 = smov %s933_s13 }
  0xfa   : > { %p10_p5 = scmp.ge.s32.totalorder %s13_s14, 4   ;;  %s1085_s13 = smov %s1087_s15 }
  0xfc   :  { %12 = sbr.rel (!%p10_p5) target bundleno = 2 (0x2), region = 62 }

</bundles_post_ra>
